<compile_context>
chip_gen: v5e
topology: v5e:2x2
jax: 0.10.0
libtpu: 0.0.40
codegen_flags: <defaults>
</compile_context>

<pallas_src>
import jax
import jax.numpy as jnp
from jax.experimental import pallas as pl
from jax.experimental.pallas import tpu as pltpu


def conv1x1_kernel(w_ref, b_ref, x_ref, o_ref):
    # w_ref: (tco, C_in)   bf16 weight tile (constant across n / hw steps)
    # b_ref: (tco, 1)      f32 bias column
    # x_ref: (C_in, thw)   bf16 activation tile (batch dim squeezed)
    # o_ref: (tco, thw)    lane-dense output tile in the original dtype
    acc = jnp.dot(w_ref[...], x_ref[...], preferred_element_type=jnp.float32)
    o_ref[...] = (acc + b_ref[...]).astype(o_ref.dtype)


_LANE = 128
_MAX_THW = 2048                         # large lane tile: >=85% of HBM roofline
_MAX_TCO = 256                          # MXU-native M on v6e/v7x (multiple of v5e's 128)
_VMEM_TILE_BUDGET = 24 * 1024 * 1024    # double-buffered working-set budget
_VMEM_LIMIT_CAP = 48 * 1024 * 1024      # stay well under v7x's 64 MiB physical VMEM


def _round_up(x, m):
    return ((x + m - 1) // m) * m


def conv_block_forward(x_nchw, weight, bias, compute_dtype=jnp.bfloat16):
    """ConvBlock.forward: 1x1 conv, NCHW in -> NCHW out.

    x_nchw : (N, C_in, H, W)
    weight : (C_out, C_in)   (PyTorch conv weight squeezed from (C_out, C_in, 1, 1))
    bias   : (C_out,)
    """
    N, C_in, H, W = x_nchw.shape
    C_out = weight.shape[0]
    HW = H * W
    out_dtype = x_nchw.dtype

    # ---------------- tiling ----------------
    HW_pad = _round_up(HW, _LANE)            # keep the lane axis 128-aligned
    thw = min(_MAX_THW, HW_pad)              # fixed big lane tile (multiple of 128)
    tco = min(C_out, _MAX_TCO)

    x_bytes = jnp.dtype(compute_dtype).itemsize
    o_bytes = jnp.dtype(out_dtype).itemsize

    def dbuf_bytes(t):
        # double-buffered activation + output tiles, plus weight/bias tiles
        return (2 * t * (C_in * x_bytes + tco * o_bytes)
                + 2 * tco * (C_in * x_bytes + 4))

    # Shrink the lane tile (keeping it 128-aligned) only if the double-buffered
    # working set would exceed the VMEM budget (production channel widths).
    while dbuf_bytes(thw) > _VMEM_TILE_BUDGET and thw > _LANE:
        thw = max(_LANE, (thw // 2) // _LANE * _LANE)

    n_hw = pl.cdiv(HW_pad, thw)
    n_co = pl.cdiv(C_out, tco)

    # ---------------- wrapper-side layout ----------------
    x_rows = x_nchw.reshape(N, C_in, HW).astype(compute_dtype)   # free reshape
    if HW_pad != HW:
        x_rows = jnp.pad(x_rows, ((0, 0), (0, 0), (0, HW_pad - HW)))
    w = weight.astype(compute_dtype)
    b_col = bias.astype(jnp.float32).reshape(C_out, 1)

    cost = pl.CostEstimate(
        flops=2 * N * C_out * C_in * HW,
        transcendentals=0,
        bytes_accessed=(x_rows.size * x_bytes + w.size * x_bytes
                        + b_col.size * 4 + N * C_out * HW * o_bytes),
    )

    out = pl.pallas_call(
        conv1x1_kernel,
        out_shape=jax.ShapeDtypeStruct((N, C_out, HW_pad), out_dtype),
        grid_spec=pltpu.PrefetchScalarGridSpec(
            num_scalar_prefetch=0,
            # C_out innermost: the (large) x tile's block index is unchanged
            # across it, so Pallas does not re-fetch it; only the small weight
            # tile is re-indexed per step.
            grid=(N, n_hw, n_co),
            in_specs=[
                # Weight / bias: constant over (n, hw); indexed per C_out tile.
                pl.BlockSpec((tco, C_in), lambda n, j, co: (co, 0)),
                pl.BlockSpec((tco, 1), lambda n, j, co: (co, 0)),
                # Activation: batch dim squeezed, full C_in, lane-tiled HW.
                pl.BlockSpec((None, C_in, thw), lambda n, j, co: (n, 0, j)),
            ],
            out_specs=pl.BlockSpec((None, tco, thw), lambda n, j, co: (n, co, j)),
        ),
        compiler_params=pltpu.CompilerParams(
            # All axes parallel (no reduction axis): lets v7x shard the grid
            # across its 2 TensorCores; neutral on v5e/v6e.
            dimension_semantics=("parallel", "parallel", "parallel"),
            vmem_limit_bytes=int(min(max(2 * dbuf_bytes(thw), 32 * 1024 * 1024),
                                     _VMEM_LIMIT_CAP)),
        ),
        cost_estimate=cost,
    )(w, b_col, x_rows)

    if HW_pad != HW:
        out = out[:, :, :HW]
    return out.reshape(N, C_out, H, W)


if __name__ == "__main__":
    # Small shapes consistent with the module: batch=2, in_channels=4,
    # out_channels=8, spatial=16x16.
    N, C_in, C_out, Hs, Ws = 2, 4, 8, 16, 16

    key = jax.random.PRNGKey(0)
    kx, kw, kb = jax.random.split(key, 3)

    x = jax.random.normal(kx, (N, C_in, Hs, Ws), dtype=jnp.float32)

    # Deterministic parameter init (PyTorch-style uniform bound for Conv2d k=1).
    bound = 1.0 / (C_in ** 0.5)
    weight = jax.random.uniform(kw, (C_out, C_in), jnp.float32, -bound, bound)
    bias = jax.random.uniform(kb, (C_out,), jnp.float32, -bound, bound)

    out = conv_block_forward(x, weight, bias)
    jax.block_until_ready(out)

    # Reference applies the same bf16 input rounding the kernel uses; the
    # matmul itself accumulates in f32 in both cases.
    x_q = x.astype(jnp.bfloat16).astype(jnp.float32)
    w_q = weight.astype(jnp.bfloat16).astype(jnp.float32)
    ref = jnp.einsum("nchw,oc->nohw", x_q, w_q) + bias[None, :, None, None]

    assert out.shape == (N, C_out, Hs, Ws)
    assert out.dtype == x.dtype
    assert jnp.allclose(out, ref, atol=1e-4, rtol=1e-4)

    print("KERNEL_OK")
</pallas_src>

<mosaic_0001>
module attributes {stable_mosaic.version = 11 : i64} {
  func.func @conv1x1_kernel(%arg0: i32, %arg1: i32, %arg2: i32, %arg3: memref<8x4xbf16, #tpu.memory_space<vmem>>, %arg4: memref<8x1xf32, #tpu.memory_space<vmem>>, %arg5: memref<1x4x256xbf16, #tpu.memory_space<vmem>>, %arg6: memref<1x8x256xf32, #tpu.memory_space<vmem>>) attributes {dimension_semantics = [#tpu.dimension_semantics<parallel>, #tpu.dimension_semantics<parallel>, #tpu.dimension_semantics<parallel>], iteration_bounds = array<i64: 2, 1, 1>, scalar_prefetch = 0 : i64, scratch_operands = 0 : i64, tpu.core_type = #tpu.core_type<tc>, window_params = [{transform_indices = @transform_0, window_bounds = array<i64: 8, 4>}, {transform_indices = @transform_1, window_bounds = array<i64: 8, 1>}, {transform_indices = @transform_2, window_bounds = array<i64: 1, 4, 256>}, {transform_indices = @transform_3, window_bounds = array<i64: 1, 8, 256>}]} {
    %c0 = arith.constant 0 : index
    %c0_0 = arith.constant 0 : index
    %0 = vector.load %arg3[%c0, %c0_0] : memref<8x4xbf16, #tpu.memory_space<vmem>>, vector<8x4xbf16>
    %c0_1 = arith.constant 0 : index
    %c0_2 = arith.constant 0 : index
    %c0_3 = arith.constant 0 : index
    %1 = vector.load %arg5[%c0_1, %c0_2, %c0_3] : memref<1x4x256xbf16, #tpu.memory_space<vmem>>, vector<1x4x256xbf16>
    %2 = vector.shape_cast %1 : vector<1x4x256xbf16> to vector<4x256xbf16>
    %cst = arith.constant dense<0.000000e+00> : vector<8x256xf32>
    %3 = tpu.matmul %0, %2, %cst {dimension_numbers = #tpu.dot_dimension_numbers<[1], [0], [0], [1], [0, 0, 1, 1], [], []>} : vector<8x4xbf16>, vector<4x256xbf16>, vector<8x256xf32> -> vector<8x256xf32>
    %c0_4 = arith.constant 0 : index
    %c0_5 = arith.constant 0 : index
    %4 = vector.load %arg4[%c0_4, %c0_5] : memref<8x1xf32, #tpu.memory_space<vmem>>, vector<8x1xf32>
    %5 = vector.broadcast %4 : vector<8x1xf32> to vector<8x256xf32>
    %6 = arith.addf %3, %5 : vector<8x256xf32>
    %c0_6 = arith.constant 0 : index
    %c0_7 = arith.constant 0 : index
    %c0_8 = arith.constant 0 : index
    %7 = vector.load %arg6[%c0_6, %c0_7, %c0_8] : memref<1x8x256xf32, #tpu.memory_space<vmem>>, vector<1x8x256xf32>
    %8 = vector.shape_cast %7 : vector<1x8x256xf32> to vector<8x256xf32>
    %9 = vector.shape_cast %6 : vector<8x256xf32> to vector<1x8x256xf32>
    tpu.vector_store %arg6[%c0_6, %c0_7, %c0_8], %9 {strides = array<i32>} : memref<1x8x256xf32, #tpu.memory_space<vmem>>, vector<1x8x256xf32>,
    return
  }
  func.func @transform_0(%arg0: i32, %arg1: i32, %arg2: i32) -> (i32, i32) {
    %c0_i32 = arith.constant 0 : i32
    %c0_i32_0 = arith.constant 0 : i32
    return %arg2, %c0_i32 : i32, i32
  }
  func.func @transform_1(%arg0: i32, %arg1: i32, %arg2: i32) -> (i32, i32) {
    %c0_i32 = arith.constant 0 : i32
    %c0_i32_0 = arith.constant 0 : i32
    return %arg2, %c0_i32 : i32, i32
  }
  func.func @transform_2(%arg0: i32, %arg1: i32, %arg2: i32) -> (i32, i32, i32) {
    %c0_i32 = arith.constant 0 : i32
    %c0_i32_0 = arith.constant 0 : i32
    return %arg0, %c0_i32, %arg1 : i32, i32, i32
  }
  func.func @transform_3(%arg0: i32, %arg1: i32, %arg2: i32) -> (i32, i32, i32) {
    %c0_i32 = arith.constant 0 : i32
    return %arg0, %arg2, %arg1 : i32, i32, i32
  }
}

</mosaic_0001>

<bundles_post_ra>
// kernel: tpu_custom_call.1
= control target key start
LH: loop header
LB: loop body
LE: loop exit
PB: predicated region body
PF: predicated region fallthrough
CT: control target
= control target key end

     0   :  { %8 = vsyncpa [#allocation3], 0  ;;  %s705_s0 = inlined_call_operand.vmem [shape: bf16[8,4], index: 0, kind: input, shape index: {}]   ;;  %s706_s1 = inlined_call_operand.vmem [shape: f32[8,1], index: 1, kind: input, shape index: {}]   ;;  %s707_s2 = inlined_call_operand.vmem [shape: bf16[2,4,256], index: 2, kind: input, shape index: {}]   ;;  %s708_s3 = inlined_call_operand.hbm [shape: f32[2,8,256], index: 3, kind: output, shape index: {}]  }
   0x1   :  { %10 = vsyncpa [#allocation3 + $0x1], 0  ;;  %s602_s12 = smov 0   ;;  %s604_s13 = smov 0  }
   0x2   :  { %s606_s14 = smov 0   ;;  %s608_s15 = smov 0  }
   0x3   :  { %s610_s16 = smov 0   ;;  %s612_s17 = smov 0  }
   0x4 LB: > { %s425_s18 = sadd.s32 4294967295, %s579_s17   ;;  %s426_s19 = sadd.s32 4294967294, %s579_s17   ;;  %s579_s17 = sphi %s612_s17, %s16_s17   ;;  %s575_s16 = sphi %s610_s16, %s715_s16   ;;  %s571_s15 = sphi %s608_s15, %s714_s15   ;;  %s567_s14 = sphi %s606_s14, %s713_s14   ;;  %s563_s13 = sphi %s604_s13, %s712_s13   ;;  %s559_s12 = sphi %s602_s12, %s711_s12  }
   0x5   : > { %s35_s20 = sadd.s32 1, %s575_s16  ;;  %s126_s21 = sadd.s32 1, %s567_s14 }
   0x6   : > { %p37_p0 = scmp.ge.s32.totalorder %s35_s20, 2  ;;  %p136_p1 = scmp.ne.s32.totalorder %s567_s14, %s563_s13 }
   0x7   : > { %p137_p2 = scmp.eq.s32.totalorder %s425_s18, 1  ;;  %p142_p3 = scmp.ne.s32.totalorder %s563_s13, %s559_s12 }
   0x8   : > { %s717_s20 = smov (%p37_p0, %s35_s20), 0  ;;  %p143_p5 = scmp.eq.s32.totalorder %s426_s19, 1 }
   0x9   : > { %p642_p4 = por %p137_p2, %p136_p1  ;;  %s119_s23 = ssub.s32 %s575_s16, %s717_s20 }
   0xa   : > { %p431_p6 = scmp.ge.s32.totalorder %s579_s17, 1  ;;  %p124_p7 = scmp.eq.s32.totalorder %s119_s23, 0 }
   0xb   : > { %p649_p8 = por %p143_p5, %p142_p3  ;;  %p188_p9 = scmp.lt.s32.totalorder %s579_s17, 3 }
   0xc   : > { %s655_s25 = scalar_select %p124_p7, %s567_s14, %s126_s21  }
   0xd   : > { %p189_p10 = pnand %p431_p6, %p188_p9 }
   0xe   : > { %p233_p11 = scmp.lt.s32.totalorder (!%p189_p10), %s571_s15, 1  ;;  %s221_s8 = sand.u32 (!%p189_p10), 1, %s563_s13  }
   0xf   : > { %192 = sbr.rel (%p189_p10) target bundleno = 171 (0xab), region = 32  ;;  %s443_s9 = sshll.u32 (!%p189_p10), %s571_s15, 4 }
  0x10   : > { %s432_s10 = sshll.u32 (!%p189_p10), %s221_s8, 4  ;;  %s309_s19 = scalar_lea.hbm (!%p189_p10), %s708_s3, %s443_s9 }
  0x11   : > { %s223_s21 = scalar_lea.vmem (!%p189_p10), [#allocation2], %s432_s10  ;;  %s313_s26 = sshll.u32 (!%p189_p10), %s309_s19, 4  ;;  %s314_s26 = int_to_ptr.hbm [resolvable:$true] %s313_s26 }
  0x12   : > { %s311_s23 = sshll.u32 (!%p189_p10), %s223_s21, 4  ;;  %s294_s27 = scalar_lea.sflag (!%p189_p10), [#allocation3], %s221_s8  ;;  %s312_s23 = int_to_ptr.vmem [resolvable:$true] %s311_s23 }
  0x13   : > { %s521_s4 = scalar_lea.hbm (!%p189_p10), %s708_s3, 32 }
  0x14   : > { %v581_v0 = vmov 0   ;;  %v246_v1 = vld [vmem:[%s706_s1] sm:$0xff]  ;;  %s234_s28 = scalar_select %p233_p11, %s571_s15, 1  ;;  %vm260_vm0 = vcmask 1041408   ;;  %vm256_vm1 = vcmask 31744  }
  0x15   : > { %500 = vset.pattern.permute.xlu0 %v581_v0  ;;  %v244_v7 = vld [vmem:[%s705_s0] sm:$0xf]  ;;  %s515_s15 = sshra.s32 %s314_s26, 4  ;;  %s516_s15 = int_to_ptr.hbm [resolvable:$true] %s515_s15 }
  0x16   : > { %249 = vperm.xlu0 %500, %v246_v1   ;;  %s442_s29 = sshll.u32 %s234_s28, 2  ;;  %s517_s28 = scalar_lea.hbm %s516_s15, 16 }
  0x17   : > { %s240_s5 = scalar_lea.vmem %s707_s2, %s442_s29  ;;  %p518_p12 = scmp.ne.s32.totalorder %s516_s15, %s517_s28 }
  0x18   : > { %v245_v2 = vld [vmem:[%s240_s5] sm:$0xf]  ;;  %p522_p1 = scmp.lt.s32.totalorder %s516_s15, %s708_s3  ;;  %p523_p2 = scmp.lt.s32.totalorder %s521_s4, %s517_s28 }
  0x19   : > { %253 = vst [vmem:[#allocation1] ss:$4 sm:$0xff] %v245_v2  ;;  %p519_p13 = pnand %p518_p12, %p642_p4 }
  0x1a   : > { %p524_p3 = por %p523_p2, %p522_p1 }
  0x1b   : > { %p520_p0 = pneg %p519_p13 }
  0x1d   : > { %p525_p5 = pnand %p524_p3, %p520_p0 }
  0x20   : > { %v254_v3 = vld.sshfl [vmem:[#allocation1] sm:$0xff pattern:$0x73625140]  ;;  %v255_v4 = vld.sshfl [vmem:[#allocation1 + $0x8] sm:$0xff pattern:$0x73625140] }
  0x21   : > { %v261_v5 = vsel %vm260_vm0, %v254_v3, 0  ;;  %v263_v6 = vsel %vm260_vm0, %v255_v4, 0 }
  0x22   : > { %272 = vmatpush.bf16.msra.mxu0 %v261_v5  ;;  %285 = vmatpush.bf16.msra.mxu1 %v263_v6 }
  0x25   : > { %435 = vmatmul.msk.bf16.vlgmr.msra.gmra.mxu0 %vm256_vm1, %v244_v7  ;;  %436 = vmatmul.msk.bf16.vlgmr.msra.gmra.mxu1 %vm256_vm1, %v244_v7 }
  0x88   : > { %v250_v8 = vpop.permute.xlu0 %249 }
  0xa2   : > { %v274_v9 = vpop.f32.mrf.mxu0  ;;  %v287_v10 = vpop.f32.mrf.mxu1 }
  0xa3   : > { %v275_v11 = vadd.f32 %v274_v9, %v250_v8  ;;  %v288_v12 = vadd.f32 %v287_v10, %v250_v8 }
  0xa5   : > { %291 = vst [vmem:[%s223_s21] sm:$0xff] %v275_v11 }
  0xa6   : > { %292 = vst [vmem:[%s223_s21 + $0x8] sm:$0xff] %v288_v12 }
  0xa7   : > { %528 = shalt.err (!%p525_p5)
}
  0xa8   : > { %444 = dma.vmem_to_hbm [thread:$0]  (%p642_p4), %s312_s23, 256, %s314_s26, %s294_s27  }
  0xaa   : > { %v276_v13 = vpop.f32.mrf.mxu0  ;;  %v289_v14 = vpop.f32.mrf.mxu1 }
  0xab PF: > { %p450_p6 = scmp.ge.s32.totalorder %s579_s17, 2  ;;  %s325_s7 = sand.u32 1, %s559_s12  }
  0xac   : > { %s326_s8 = scalar_lea.sflag [#allocation3], %s325_s7 }
  0xad   : > { %p447_p7 = pnand %p450_p6, %p649_p8 }
  0xaf   : > { %p448_p9 = pneg %p447_p7 }
  0xb1   : > { %554 = dma.done.wait (%p448_p9), %s326_s8, 256  }
  0xb2   : > { %556 = vsyncadd (%p448_p9), %s326_s8, 4294967040  ;;  %s16_s17 = sadd.s32 1, %s579_s17   ;;  %s711_s12 = smov %s563_s13 }
  0xb3   : > { %p13_p10 = scmp.ge.s32.totalorder %s16_s17, 4   ;;  %s712_s13 = smov %s567_s14 }
  0xb4   : > { %s713_s14 = smov %s655_s25  ;;  %s714_s15 = smov %s575_s16 }
  0xb5   : > { %s715_s16 = smov %s717_s20  ;;  %15 = sbr.rel (!%p13_p10) target bundleno = 4 (0x4), region = 73 }
  0xba   :  { %332 = vsyncpa [#allocation3], 1 }
  0xbb   :  { %334 = vsyncpa [#allocation3 + $0x1], 1 }

</bundles_post_ra>
